<compile_context>
chip_gen: v6e
topology: v6e:2x2x1
jax: 0.10.0
libtpu: 0.0.40
codegen_flags: <defaults>
</compile_context>

<pallas_src>
import jax
import jax.numpy as jnp
from jax.experimental import pallas as pl
from jax.experimental.pallas import tpu as pltpu

# ----------------------------- configuration (small, synthetic) -----------------------------
B = 2          # batch
T = 288        # waveform samples
WIN = 64       # analysis window
HOP = 32       # hop size
assert WIN == 2 * HOP, "framing-as-two-matmuls assumes 50% overlap (WIN == 2*HOP)"
assert (T - WIN) % HOP == 0
F = (T - WIN) // HOP + 1   # frames per utterance = 8
BF = B * F                 # batch folded into rows = 16
KBINS = 32     # "spectral" bins (DFT matmul)
NMEL = 24      # mel-like filterbank channels
C = 32         # TDNN channels
EMB = 32       # embedding dim
NCLS = 16      # number of classes
K1, K2 = 5, 3  # conv kernel sizes
LANES = 128
OUT_PAD = LANES - EMB - NCLS   # 80 zero lanes in the packed output

# Weight-slab row offsets (all multiples of 8 -> aligned f32 (8,128) carving).
ROW_DFT = 0                       # [WIN, 2*KBINS]   rows 0..63
ROW_MEL2 = ROW_DFT + WIN          # [2*KBINS, NMEL]  rows 64..127
ROW_W1 = ROW_MEL2 + 2 * KBINS     # [K1*NMEL, C]     rows 128..247 (tap t at +t*NMEL)
ROW_W2 = ROW_W1 + K1 * NMEL       # [K2*C, C]        rows 248..343 (tap t at +t*C)
ROW_WEMB = ROW_W2 + K2 * C        # [2*C, EMB]       rows 344..407
ROW_WCLS = ROW_WEMB + 2 * C       # [EMB, NCLS]      rows 408..439
SLAB_ROWS = ROW_WCLS + EMB        # 440 (= 55 * 8)


# ----------------------------- fused kernel -----------------------------
def _wslice(w_ref, r0, nrows, ncols):
    """Static, 8-row-aligned carve of the f32 weight slab, cast to bf16 for the MXU."""
    return w_ref[r0:r0 + nrows, 0:ncols].astype(jnp.bfloat16)


def _conv1d_relu_per_tap(x, w_ref, row0, cin, cout, taps, bias):
    """'same'-padded 1-D conv over time (per utterance) + bias + ReLU.

    Per-tap MXU accumulation: y = sum_t shift_t(x) @ w[t].  Time shifts are static
    sublane slices of a per-utterance zero-padded [B, F+taps-1, cin] view so taps never
    bleed across the folded batch boundary.  x: [B*F, cin] f32.
    """
    pad_l = (taps - 1) // 2
    pad_r = taps - 1 - pad_l
    x3 = x.reshape(B, F, cin)
    xp = jnp.concatenate(
        [jnp.zeros((B, pad_l, cin), jnp.float32), x3,
         jnp.zeros((B, pad_r, cin), jnp.float32)], axis=1)            # [B, F+taps-1, cin]
    acc = jnp.zeros((BF, cout), jnp.float32)
    for t in range(taps):                                             # static unroll
        xt = xp[:, t:t + F, :].reshape(BF, cin).astype(jnp.bfloat16)
        wt = _wslice(w_ref, row0 + t * cin, cin, cout)                # [cin, cout] bf16
        acc = acc + jnp.dot(xt, wt, preferred_element_type=jnp.float32)
    return jnp.maximum(acc + bias, 0.0)


def _fused_kernel(v0_ref, v1_ref, w_ref, b_ref, out_ref):
    # ---- framing + windowed DFT: two accumulating matmuls (no in-kernel concat) ----
    v0 = v0_ref[...].astype(jnp.bfloat16)                             # [BF, HOP]
    v1 = v1_ref[...].astype(jnp.bfloat16)                             # [BF, HOP]
    dft_top = _wslice(w_ref, ROW_DFT, HOP, 2 * KBINS)
    dft_bot = _wslice(w_ref, ROW_DFT + HOP, HOP, 2 * KBINS)
    spec = (jnp.dot(v0, dft_top, preferred_element_type=jnp.float32)
            + jnp.dot(v1, dft_bot, preferred_element_type=jnp.float32))   # [BF, 2*KBINS] f32

    # ---- power -> mel-ish filterbank -> log ----
    mel2 = _wslice(w_ref, ROW_MEL2, 2 * KBINS, NMEL)
    mel_e = jnp.dot((spec * spec).astype(jnp.bfloat16), mel2,
                    preferred_element_type=jnp.float32)                   # [BF, NMEL]
    feats = jnp.log(mel_e + 1e-6)

    # ---- mean_var_norm: per-utterance mean subtraction over time (std_norm=False) ----
    f3 = feats.reshape(B, F, NMEL)
    feats = (f3 - jnp.mean(f3, axis=1, keepdims=True)).reshape(BF, NMEL)
    # TODO(synk): wav_lens-based masking of padded frames not implemented (wav_lens == 1.0 here).

    # ---- TDNN: two 'same' conv1d + ReLU via per-tap MXU accumulation ----
    b1 = b_ref[0:1, 0:C]
    b2 = b_ref[1:2, 0:C]
    h = _conv1d_relu_per_tap(feats, w_ref, ROW_W1, NMEL, C, K1, b1)       # [BF, C]
    h = _conv1d_relu_per_tap(h, w_ref, ROW_W2, C, C, K2, b2)              # [BF, C]

    # ---- stats pooling (per utterance) ----
    h3 = h.reshape(B, F, C)
    mu = jnp.mean(h3, axis=1)                                             # [B, C]
    var = jnp.mean(h3 * h3, axis=1) - mu * mu
    sd = jnp.sqrt(jnp.maximum(var, 0.0) + 1e-6)

    # ---- embedding: split matmul instead of concat([mu, sd]) @ wemb ----
    wemb_mu = _wslice(w_ref, ROW_WEMB, C, EMB)
    wemb_sd = _wslice(w_ref, ROW_WEMB + C, C, EMB)
    bemb = b_ref[2:3, 0:EMB]
    emb = (jnp.dot(mu.astype(jnp.bfloat16), wemb_mu, preferred_element_type=jnp.float32)
           + jnp.dot(sd.astype(jnp.bfloat16), wemb_sd, preferred_element_type=jnp.float32)
           + bemb)                                                        # [B, EMB]

    # ---- classifier + log_softmax ----
    wcls = _wslice(w_ref, ROW_WCLS, EMB, NCLS)
    bcls = b_ref[3:4, 0:NCLS]
    logits = (jnp.dot(emb.astype(jnp.bfloat16), wcls,
                      preferred_element_type=jnp.float32) + bcls)         # [B, NCLS]
    z = logits - jnp.max(logits, axis=-1, keepdims=True)
    logp = z - jnp.log(jnp.sum(jnp.exp(z), axis=-1, keepdims=True))       # log-posteriors

    # ---- ONE lane-dense packed output slab: [emb | log-probs | zeros] ----
    out_ref[...] = jnp.concatenate(
        [emb, logp, jnp.zeros((B, OUT_PAD), jnp.float32)], axis=1)        # [B, 128]


# ----------------------------- pallas_call wrapper -----------------------------
def fused_forward(v0, v1, wslab, bslab):
    vmem = pl.BlockSpec(memory_space=pltpu.MemorySpace.VMEM)   # whole-array in VMEM, no grid
    return pl.pallas_call(
        _fused_kernel,
        out_shape=jax.ShapeDtypeStruct((B, LANES), jnp.float32),
        in_specs=[vmem, vmem, vmem, vmem],
        out_specs=vmem,
    )(v0, v1, wslab, bslab)


# ----------------------------- parameter setup (deterministic, glue) -----------------------------
def make_dft_matrix():
    """Packed windowed-DFT projection [WIN, 2*KBINS] = [cos | -sin], Hann (periodic) windowed."""
    w = jnp.arange(WIN, dtype=jnp.float32)
    k = jnp.arange(KBINS, dtype=jnp.float32)
    hann = 0.5 - 0.5 * jnp.cos(2.0 * jnp.pi * w / WIN)   # periodic (torch.hann_window default)
    ang = 2.0 * jnp.pi * w[:, None] * k[None, :] / WIN
    cosm = jnp.cos(ang) * hann[:, None]
    sinm = -jnp.sin(ang) * hann[:, None]
    return jnp.concatenate([cosm, sinm], axis=1).astype(jnp.float32)   # [WIN, 2*KBINS]


def make_filterbank2():
    """Stacked filterbank [2*KBINS, NMEL] so that (re^2+im^2)@mel == (spec*spec)@mel2."""
    # TODO(synk): linear-spaced triangular filters instead of true HTK mel scale.
    pts = jnp.linspace(0.0, KBINS - 1.0, NMEL + 2)
    bins = jnp.arange(KBINS, dtype=jnp.float32)
    left, center, right = pts[:-2], pts[1:-1], pts[2:]
    up = (bins[None, :] - left[:, None]) / jnp.maximum(center - left, 1e-6)[:, None]
    down = (right[:, None] - bins[None, :]) / jnp.maximum(right - center, 1e-6)[:, None]
    fb = jnp.maximum(0.0, jnp.minimum(up, down))          # [NMEL, KBINS]
    mel = fb.T.astype(jnp.float32)                        # [KBINS, NMEL]
    return jnp.concatenate([mel, mel], axis=0)            # [2*KBINS, NMEL]


def init_params(key):
    ks = jax.random.split(key, 8)
    w1 = jax.random.normal(ks[0], (K1, NMEL, C), jnp.float32) * 0.1
    b1 = jax.random.normal(ks[1], (C,), jnp.float32) * 0.01
    w2 = jax.random.normal(ks[2], (K2, C, C), jnp.float32) * 0.1
    b2 = jax.random.normal(ks[3], (C,), jnp.float32) * 0.01
    wemb = jax.random.normal(ks[4], (2 * C, EMB), jnp.float32) * 0.1
    bemb = jax.random.normal(ks[5], (EMB,), jnp.float32) * 0.01
    wcls = jax.random.normal(ks[6], (EMB, NCLS), jnp.float32) * 0.1
    bcls = jax.random.normal(ks[7], (NCLS,), jnp.float32) * 0.01

    # One weight slab [440, 128] f32 (all row offsets multiples of 8).
    wslab = jnp.zeros((SLAB_ROWS, LANES), jnp.float32)
    wslab = wslab.at[ROW_DFT:ROW_DFT + WIN, 0:2 * KBINS].set(make_dft_matrix())
    wslab = wslab.at[ROW_MEL2:ROW_MEL2 + 2 * KBINS, 0:NMEL].set(make_filterbank2())
    wslab = wslab.at[ROW_W1:ROW_W1 + K1 * NMEL, 0:C].set(w1.reshape(K1 * NMEL, C))
    wslab = wslab.at[ROW_W2:ROW_W2 + K2 * C, 0:C].set(w2.reshape(K2 * C, C))
    wslab = wslab.at[ROW_WEMB:ROW_WEMB + 2 * C, 0:EMB].set(wemb)
    wslab = wslab.at[ROW_WCLS:ROW_WCLS + EMB, 0:NCLS].set(wcls)

    # One bias slab [8, 128] f32, one bias per row starting at lane 0 (no lane shifts to carve).
    bslab = jnp.zeros((8, LANES), jnp.float32)
    bslab = bslab.at[0, 0:C].set(b1)
    bslab = bslab.at[1, 0:C].set(b2)
    bslab = bslab.at[2, 0:EMB].set(bemb)
    bslab = bslab.at[3, 0:NCLS].set(bcls)
    return {"wslab": wslab, "bslab": bslab}


# ----------------------------- full forward (classify_batch) -----------------------------
def encoder_classifier_forward(wavs, wav_lens, params):
    del wav_lens  # all lengths == 1.0 here; TODO(synk): length masking for padded batches.
    # Two hop-shifted free-reshaped views; overlapping frames are summed as two matmuls in-kernel.
    v0 = wavs[:, :F * HOP].reshape(BF, HOP)          # first half of each frame
    v1 = wavs[:, HOP:HOP + F * HOP].reshape(BF, HOP)  # second half of each frame
    packed = fused_forward(v0, v1, params["wslab"], params["bslab"])   # [B, 128] lane-dense slab

    emb = packed[:, :EMB].reshape(B, 1, EMB)          # embeddings [B, 1, EMB]
    out_prob = packed[:, EMB:EMB + NCLS]              # .squeeze(1) -> [B, NCLS]
    score = jnp.max(out_prob, axis=-1)                # glue: tiny reductions on [B, NCLS]
    index = jnp.argmax(out_prob, axis=-1)
    # TODO(synk): label_encoder.decode_torch (text labels) has no numeric equivalent; omitted.
    return out_prob, score, index, emb


if __name__ == "__main__":
    key = jax.random.PRNGKey(0)
    kw, kp = jax.random.split(key)
    wavs = jax.random.normal(kw, (B, T), jnp.float32)
    wav_lens = jnp.ones((B,), jnp.float32)

    params = init_params(kp)

    fwd = jax.jit(lambda w, wl: encoder_classifier_forward(w, wl, params))
    out_prob, score, index, emb = fwd(wavs, wav_lens)
    jax.block_until_ready((out_prob, score, index, emb))

    assert out_prob.shape == (B, NCLS)
    assert score.shape == (B,)
    assert index.shape == (B,)
    assert emb.shape == (B, 1, EMB)
    assert bool(jnp.all(jnp.isfinite(out_prob)))
    assert bool(jnp.all(jnp.isfinite(emb)))
    print("KERNEL_OK")
</pallas_src>

<mosaic_0001>
module attributes {stable_mosaic.version = 11 : i64} {
  func.func @_fused_kernel(%arg0: memref<16x32xf32, #tpu.memory_space<vmem>>, %arg1: memref<16x32xf32, #tpu.memory_space<vmem>>, %arg2: memref<440x128xf32, #tpu.memory_space<vmem>>, %arg3: memref<8x128xf32, #tpu.memory_space<vmem>>, %arg4: memref<2x128xf32, #tpu.memory_space<vmem>>) attributes {dimension_semantics = [], scalar_prefetch = 0 : i64, scratch_operands = 0 : i64, tpu.core_type = #tpu.core_type<tc>} {
    %c0 = arith.constant 0 : index
    %c0_0 = arith.constant 0 : index
    %0 = vector.load %arg0[%c0, %c0_0] : memref<16x32xf32, #tpu.memory_space<vmem>>, vector<16x32xf32>
    %1 = arith.truncf %0 : vector<16x32xf32> to vector<16x32xbf16>
    %c0_1 = arith.constant 0 : index
    %c0_2 = arith.constant 0 : index
    %2 = vector.load %arg1[%c0_1, %c0_2] : memref<16x32xf32, #tpu.memory_space<vmem>>, vector<16x32xf32>
    %3 = arith.truncf %2 : vector<16x32xf32> to vector<16x32xbf16>
    %c0_3 = arith.constant 0 : index
    %c0_4 = arith.constant 0 : index
    %4 = vector.load %arg2[%c0_3, %c0_4] : memref<440x128xf32, #tpu.memory_space<vmem>>, vector<32x64xf32>
    %5 = arith.truncf %4 : vector<32x64xf32> to vector<32x64xbf16>
    %c32 = arith.constant 32 : index
    %c0_5 = arith.constant 0 : index
    %6 = vector.load %arg2[%c32, %c0_5] : memref<440x128xf32, #tpu.memory_space<vmem>>, vector<32x64xf32>
    %7 = arith.truncf %6 : vector<32x64xf32> to vector<32x64xbf16>
    %cst = arith.constant dense<0.000000e+00> : vector<16x64xf32>
    %8 = tpu.matmul %1, %5, %cst {dimension_numbers = #tpu.dot_dimension_numbers<[1], [0], [0], [1], [0, 0, 1, 1], [], []>} : vector<16x32xbf16>, vector<32x64xbf16>, vector<16x64xf32> -> vector<16x64xf32>
    %cst_6 = arith.constant dense<0.000000e+00> : vector<16x64xf32>
    %9 = tpu.matmul %3, %7, %cst_6 {dimension_numbers = #tpu.dot_dimension_numbers<[1], [0], [0], [1], [0, 0, 1, 1], [], []>} : vector<16x32xbf16>, vector<32x64xbf16>, vector<16x64xf32> -> vector<16x64xf32>
    %10 = arith.addf %8, %9 : vector<16x64xf32>
    %c64 = arith.constant 64 : index
    %c0_7 = arith.constant 0 : index
    %11 = vector.load %arg2[%c64, %c0_7] : memref<440x128xf32, #tpu.memory_space<vmem>>, vector<64x24xf32>
    %12 = arith.truncf %11 : vector<64x24xf32> to vector<64x24xbf16>
    %13 = arith.mulf %10, %10 : vector<16x64xf32>
    %14 = arith.truncf %13 : vector<16x64xf32> to vector<16x64xbf16>
    %cst_8 = arith.constant dense<0.000000e+00> : vector<16x24xf32>
    %15 = tpu.matmul %14, %12, %cst_8 {dimension_numbers = #tpu.dot_dimension_numbers<[1], [0], [0], [1], [0, 0, 1, 1], [], []>} : vector<16x64xbf16>, vector<64x24xbf16>, vector<16x24xf32> -> vector<16x24xf32>
    %cst_9 = arith.constant 9.99999997E-7 : f32
    %16 = vector.broadcast %cst_9 : f32 to vector<16x24xf32>
    %17 = arith.addf %15, %16 : vector<16x24xf32>
    %18 = math.log %17 : vector<16x24xf32>
    %19 = vector.shape_cast %18 : vector<16x24xf32> to vector<2x8x24xf32>
    %cst_10 = arith.constant dense<0.000000e+00> : vector<2x24xf32>
    %20 = vector.multi_reduction <add>, %19, %cst_10 [1] : vector<2x8x24xf32> to vector<2x24xf32>
    %21 = vector.shape_cast %20 : vector<2x24xf32> to vector<2x1x24xf32>
    %cst_11 = arith.constant 8.000000e+00 : f32
    %22 = vector.broadcast %cst_11 : f32 to vector<2x1x24xf32>
    %23 = arith.divf %21, %22 : vector<2x1x24xf32>
    %24 = vector.broadcast %23 : vector<2x1x24xf32> to vector<2x8x24xf32>
    %25 = arith.subf %19, %24 : vector<2x8x24xf32>
    %26 = vector.shape_cast %25 : vector<2x8x24xf32> to vector<16x24xf32>
    %c0_12 = arith.constant 0 : index
    %c0_13 = arith.constant 0 : index
    %27 = vector.load %arg3[%c0_12, %c0_13] : memref<8x128xf32, #tpu.memory_space<vmem>>, vector<1x32xf32>
    %c1 = arith.constant 1 : index
    %c0_14 = arith.constant 0 : index
    %28 = vector.load %arg3[%c1, %c0_14] : memref<8x128xf32, #tpu.memory_space<vmem>>, vector<1x32xf32>
    %29 = vector.shape_cast %26 : vector<16x24xf32> to vector<2x8x24xf32>
    %cst_15 = arith.constant 0.000000e+00 : f32
    %30 = vector.broadcast %cst_15 : f32 to vector<2x2x24xf32>
    %cst_16 = arith.constant 0.000000e+00 : f32
    %31 = vector.broadcast %cst_16 : f32 to vector<2x2x24xf32>
    %32 = tpu.concatenate %30, %29, %31 in 1 : vector<2x2x24xf32>, vector<2x8x24xf32>, vector<2x2x24xf32> -> vector<2x12x24xf32>
    %cst_17 = arith.constant 0.000000e+00 : f32
    %33 = vector.broadcast %cst_17 : f32 to vector<16x32xf32>
    %34 = vector.extract_strided_slice %32 {offsets = [0, 0, 0], sizes = [2, 8, 24], strides = [1, 1, 1]} : vector<2x12x24xf32> to vector<2x8x24xf32>
    %35 = vector.shape_cast %34 : vector<2x8x24xf32> to vector<16x24xf32>
    %36 = arith.truncf %35 : vector<16x24xf32> to vector<16x24xbf16>
    %c128 = arith.constant 128 : index
    %c0_18 = arith.constant 0 : index
    %37 = vector.load %arg2[%c128, %c0_18] : memref<440x128xf32, #tpu.memory_space<vmem>>, vector<24x32xf32>
    %38 = arith.truncf %37 : vector<24x32xf32> to vector<24x32xbf16>
    %cst_19 = arith.constant dense<0.000000e+00> : vector<16x32xf32>
    %39 = tpu.matmul %36, %38, %cst_19 {dimension_numbers = #tpu.dot_dimension_numbers<[1], [0], [0], [1], [0, 0, 1, 1], [], []>} : vector<16x24xbf16>, vector<24x32xbf16>, vector<16x32xf32> -> vector<16x32xf32>
    %40 = arith.addf %33, %39 : vector<16x32xf32>
    %41 = vector.extract_strided_slice %32 {offsets = [0, 1, 0], sizes = [2, 8, 24], strides = [1, 1, 1]} : vector<2x12x24xf32> to vector<2x8x24xf32>
    %42 = vector.shape_cast %41 : vector<2x8x24xf32> to vector<16x24xf32>
    %43 = arith.truncf %42 : vector<16x24xf32> to vector<16x24xbf16>
    %c152 = arith.constant 152 : index
    %c0_20 = arith.constant 0 : index
    %44 = vector.load %arg2[%c152, %c0_20] : memref<440x128xf32, #tpu.memory_space<vmem>>, vector<24x32xf32>
    %45 = arith.truncf %44 : vector<24x32xf32> to vector<24x32xbf16>
    %cst_21 = arith.constant dense<0.000000e+00> : vector<16x32xf32>
    %46 = tpu.matmul %43, %45, %cst_21 {dimension_numbers = #tpu.dot_dimension_numbers<[1], [0], [0], [1], [0, 0, 1, 1], [], []>} : vector<16x24xbf16>, vector<24x32xbf16>, vector<16x32xf32> -> vector<16x32xf32>
    %47 = arith.addf %40, %46 : vector<16x32xf32>
    %48 = vector.extract_strided_slice %32 {offsets = [0, 2, 0], sizes = [2, 8, 24], strides = [1, 1, 1]} : vector<2x12x24xf32> to vector<2x8x24xf32>
    %49 = vector.shape_cast %48 : vector<2x8x24xf32> to vector<16x24xf32>
    %50 = arith.truncf %49 : vector<16x24xf32> to vector<16x24xbf16>
    %c176 = arith.constant 176 : index
    %c0_22 = arith.constant 0 : index
    %51 = vector.load %arg2[%c176, %c0_22] : memref<440x128xf32, #tpu.memory_space<vmem>>, vector<24x32xf32>
    %52 = arith.truncf %51 : vector<24x32xf32> to vector<24x32xbf16>
    %cst_23 = arith.constant dense<0.000000e+00> : vector<16x32xf32>
    %53 = tpu.matmul %50, %52, %cst_23 {dimension_numbers = #tpu.dot_dimension_numbers<[1], [0], [0], [1], [0, 0, 1, 1], [], []>} : vector<16x24xbf16>, vector<24x32xbf16>, vector<16x32xf32> -> vector<16x32xf32>
    %54 = arith.addf %47, %53 : vector<16x32xf32>
    %55 = vector.extract_strided_slice %32 {offsets = [0, 3, 0], sizes = [2, 8, 24], strides = [1, 1, 1]} : vector<2x12x24xf32> to vector<2x8x24xf32>
    %56 = vector.shape_cast %55 : vector<2x8x24xf32> to vector<16x24xf32>
    %57 = arith.truncf %56 : vector<16x24xf32> to vector<16x24xbf16>
    %c200 = arith.constant 200 : index
    %c0_24 = arith.constant 0 : index
    %58 = vector.load %arg2[%c200, %c0_24] : memref<440x128xf32, #tpu.memory_space<vmem>>, vector<24x32xf32>
    %59 = arith.truncf %58 : vector<24x32xf32> to vector<24x32xbf16>
    %cst_25 = arith.constant dense<0.000000e+00> : vector<16x32xf32>
    %60 = tpu.matmul %57, %59, %cst_25 {dimension_numbers = #tpu.dot_dimension_numbers<[1], [0], [0], [1], [0, 0, 1, 1], [], []>} : vector<16x24xbf16>, vector<24x32xbf16>, vector<16x32xf32> -> vector<16x32xf32>
    %61 = arith.addf %54, %60 : vector<16x32xf32>
    %62 = vector.extract_strided_slice %32 {offsets = [0, 4, 0], sizes = [2, 8, 24], strides = [1, 1, 1]} : vector<2x12x24xf32> to vector<2x8x24xf32>
    %63 = vector.shape_cast %62 : vector<2x8x24xf32> to vector<16x24xf32>
    %64 = arith.truncf %63 : vector<16x24xf32> to vector<16x24xbf16>
    %c224 = arith.constant 224 : index
    %c0_26 = arith.constant 0 : index
    %65 = vector.load %arg2[%c224, %c0_26] : memref<440x128xf32, #tpu.memory_space<vmem>>, vector<24x32xf32>
    %66 = arith.truncf %65 : vector<24x32xf32> to vector<24x32xbf16>
    %cst_27 = arith.constant dense<0.000000e+00> : vector<16x32xf32>
    %67 = tpu.matmul %64, %66, %cst_27 {dimension_numbers = #tpu.dot_dimension_numbers<[1], [0], [0], [1], [0, 0, 1, 1], [], []>} : vector<16x24xbf16>, vector<24x32xbf16>, vector<16x32xf32> -> vector<16x32xf32>
    %68 = arith.addf %61, %67 : vector<16x32xf32>
    %69 = vector.broadcast %27 : vector<1x32xf32> to vector<16x32xf32>
    %70 = arith.addf %68, %69 : vector<16x32xf32>
    %cst_28 = arith.constant 0.000000e+00 : f32
    %71 = vector.broadcast %cst_28 : f32 to vector<16x32xf32>
    %72 = arith.maximumf %70, %71 : vector<16x32xf32>
    %73 = vector.shape_cast %72 : vector<16x32xf32> to vector<2x8x32xf32>
    %cst_29 = arith.constant 0.000000e+00 : f32
    %74 = vector.broadcast %cst_29 : f32 to vector<2x1x32xf32>
    %cst_30 = arith.constant 0.000000e+00 : f32
    %75 = vector.broadcast %cst_30 : f32 to vector<2x1x32xf32>
    %76 = tpu.concatenate %74, %73, %75 in 1 : vector<2x1x32xf32>, vector<2x8x32xf32>, vector<2x1x32xf32> -> vector<2x10x32xf32>
    %cst_31 = arith.constant 0.000000e+00 : f32
    %77 = vector.broadcast %cst_31 : f32 to vector<16x32xf32>
    %78 = vector.extract_strided_slice %76 {offsets = [0, 0, 0], sizes = [2, 8, 32], strides = [1, 1, 1]} : vector<2x10x32xf32> to vector<2x8x32xf32>
    %79 = vector.shape_cast %78 : vector<2x8x32xf32> to vector<16x32xf32>
    %80 = arith.truncf %79 : vector<16x32xf32> to vector<16x32xbf16>
    %c248 = arith.constant 248 : index
    %c0_32 = arith.constant 0 : index
    %81 = vector.load %arg2[%c248, %c0_32] : memref<440x128xf32, #tpu.memory_space<vmem>>, vector<32x32xf32>
    %82 = arith.truncf %81 : vector<32x32xf32> to vector<32x32xbf16>
    %cst_33 = arith.constant dense<0.000000e+00> : vector<16x32xf32>
    %83 = tpu.matmul %80, %82, %cst_33 {dimension_numbers = #tpu.dot_dimension_numbers<[1], [0], [0], [1], [0, 0, 1, 1], [], []>} : vector<16x32xbf16>, vector<32x32xbf16>, vector<16x32xf32> -> vector<16x32xf32>
    %84 = arith.addf %77, %83 : vector<16x32xf32>
    %85 = vector.extract_strided_slice %76 {offsets = [0, 1, 0], sizes = [2, 8, 32], strides = [1, 1, 1]} : vector<2x10x32xf32> to vector<2x8x32xf32>
    %86 = vector.shape_cast %85 : vector<2x8x32xf32> to vector<16x32xf32>
    %87 = arith.truncf %86 : vector<16x32xf32> to vector<16x32xbf16>
    %c280 = arith.constant 280 : index
    %c0_34 = arith.constant 0 : index
    %88 = vector.load %arg2[%c280, %c0_34] : memref<440x128xf32, #tpu.memory_space<vmem>>, vector<32x32xf32>
    %89 = arith.truncf %88 : vector<32x32xf32> to vector<32x32xbf16>
    %cst_35 = arith.constant dense<0.000000e+00> : vector<16x32xf32>
    %90 = tpu.matmul %87, %89, %cst_35 {dimension_numbers = #tpu.dot_dimension_numbers<[1], [0], [0], [1], [0, 0, 1, 1], [], []>} : vector<16x32xbf16>, vector<32x32xbf16>, vector<16x32xf32> -> vector<16x32xf32>
    %91 = arith.addf %84, %90 : vector<16x32xf32>
    %92 = vector.extract_strided_slice %76 {offsets = [0, 2, 0], sizes = [2, 8, 32], strides = [1, 1, 1]} : vector<2x10x32xf32> to vector<2x8x32xf32>
    %93 = vector.shape_cast %92 : vector<2x8x32xf32> to vector<16x32xf32>
    %94 = arith.truncf %93 : vector<16x32xf32> to vector<16x32xbf16>
    %c312 = arith.constant 312 : index
    %c0_36 = arith.constant 0 : index
    %95 = vector.load %arg2[%c312, %c0_36] : memref<440x128xf32, #tpu.memory_space<vmem>>, vector<32x32xf32>
    %96 = arith.truncf %95 : vector<32x32xf32> to vector<32x32xbf16>
    %cst_37 = arith.constant dense<0.000000e+00> : vector<16x32xf32>
    %97 = tpu.matmul %94, %96, %cst_37 {dimension_numbers = #tpu.dot_dimension_numbers<[1], [0], [0], [1], [0, 0, 1, 1], [], []>} : vector<16x32xbf16>, vector<32x32xbf16>, vector<16x32xf32> -> vector<16x32xf32>
    %98 = arith.addf %91, %97 : vector<16x32xf32>
    %99 = vector.broadcast %28 : vector<1x32xf32> to vector<16x32xf32>
    %100 = arith.addf %98, %99 : vector<16x32xf32>
    %cst_38 = arith.constant 0.000000e+00 : f32
    %101 = vector.broadcast %cst_38 : f32 to vector<16x32xf32>
    %102 = arith.maximumf %100, %101 : vector<16x32xf32>
    %103 = vector.shape_cast %102 : vector<16x32xf32> to vector<2x8x32xf32>
    %cst_39 = arith.constant dense<0.000000e+00> : vector<2x32xf32>
    %104 = vector.multi_reduction <add>, %103, %cst_39 [1] : vector<2x8x32xf32> to vector<2x32xf32>
    %cst_40 = arith.constant 8.000000e+00 : f32
    %105 = vector.broadcast %cst_40 : f32 to vector<2x32xf32>
    %106 = arith.divf %104, %105 : vector<2x32xf32>
    %107 = arith.mulf %103, %103 : vector<2x8x32xf32>
    %cst_41 = arith.constant dense<0.000000e+00> : vector<2x32xf32>
    %108 = vector.multi_reduction <add>, %107, %cst_41 [1] : vector<2x8x32xf32> to vector<2x32xf32>
    %cst_42 = arith.constant 8.000000e+00 : f32
    %109 = vector.broadcast %cst_42 : f32 to vector<2x32xf32>
    %110 = arith.divf %108, %109 : vector<2x32xf32>
    %111 = arith.mulf %106, %106 : vector<2x32xf32>
    %112 = arith.subf %110, %111 : vector<2x32xf32>
    %cst_43 = arith.constant 0.000000e+00 : f32
    %113 = vector.broadcast %cst_43 : f32 to vector<2x32xf32>
    %114 = arith.maximumf %112, %113 : vector<2x32xf32>
    %cst_44 = arith.constant 9.99999997E-7 : f32
    %115 = vector.broadcast %cst_44 : f32 to vector<2x32xf32>
    %116 = arith.addf %114, %115 : vector<2x32xf32>
    %117 = math.sqrt %116 : vector<2x32xf32>
    %c344 = arith.constant 344 : index
    %c0_45 = arith.constant 0 : index
    %118 = vector.load %arg2[%c344, %c0_45] : memref<440x128xf32, #tpu.memory_space<vmem>>, vector<32x32xf32>
    %119 = arith.truncf %118 : vector<32x32xf32> to vector<32x32xbf16>
    %c376 = arith.constant 376 : index
    %c0_46 = arith.constant 0 : index
    %120 = vector.load %arg2[%c376, %c0_46] : memref<440x128xf32, #tpu.memory_space<vmem>>, vector<32x32xf32>
    %121 = arith.truncf %120 : vector<32x32xf32> to vector<32x32xbf16>
    %c2 = arith.constant 2 : index
    %c0_47 = arith.constant 0 : index
    %122 = vector.load %arg3[%c2, %c0_47] : memref<8x128xf32, #tpu.memory_space<vmem>>, vector<1x32xf32>
    %123 = arith.truncf %106 : vector<2x32xf32> to vector<2x32xbf16>
    %cst_48 = arith.constant dense<0.000000e+00> : vector<2x32xf32>
    %124 = tpu.matmul %123, %119, %cst_48 {dimension_numbers = #tpu.dot_dimension_numbers<[1], [0], [0], [1], [0, 0, 1, 1], [], []>} : vector<2x32xbf16>, vector<32x32xbf16>, vector<2x32xf32> -> vector<2x32xf32>
    %125 = arith.truncf %117 : vector<2x32xf32> to vector<2x32xbf16>
    %cst_49 = arith.constant dense<0.000000e+00> : vector<2x32xf32>
    %126 = tpu.matmul %125, %121, %cst_49 {dimension_numbers = #tpu.dot_dimension_numbers<[1], [0], [0], [1], [0, 0, 1, 1], [], []>} : vector<2x32xbf16>, vector<32x32xbf16>, vector<2x32xf32> -> vector<2x32xf32>
    %127 = arith.addf %124, %126 : vector<2x32xf32>
    %128 = vector.broadcast %122 : vector<1x32xf32> to vector<2x32xf32>
    %129 = arith.addf %127, %128 : vector<2x32xf32>
    %c408 = arith.constant 408 : index
    %c0_50 = arith.constant 0 : index
    %130 = vector.load %arg2[%c408, %c0_50] : memref<440x128xf32, #tpu.memory_space<vmem>>, vector<32x16xf32>
    %131 = arith.truncf %130 : vector<32x16xf32> to vector<32x16xbf16>
    %c3 = arith.constant 3 : index
    %c0_51 = arith.constant 0 : index
    %132 = vector.load %arg3[%c3, %c0_51] : memref<8x128xf32, #tpu.memory_space<vmem>>, vector<1x16xf32>
    %133 = arith.truncf %129 : vector<2x32xf32> to vector<2x32xbf16>
    %cst_52 = arith.constant dense<0.000000e+00> : vector<2x16xf32>
    %134 = tpu.matmul %133, %131, %cst_52 {dimension_numbers = #tpu.dot_dimension_numbers<[1], [0], [0], [1], [0, 0, 1, 1], [], []>} : vector<2x32xbf16>, vector<32x16xbf16>, vector<2x16xf32> -> vector<2x16xf32>
    %135 = vector.broadcast %132 : vector<1x16xf32> to vector<2x16xf32>
    %136 = arith.addf %134, %135 : vector<2x16xf32>
    %cst_53 = arith.constant dense<0xFF800000> : vector<2xf32>
    %137 = vector.multi_reduction <maximumf>, %136, %cst_53 [1] : vector<2x16xf32> to vector<2xf32>
    %138 = vector.shape_cast %137 : vector<2xf32> to vector<2x1xf32>
    %139 = vector.broadcast %138 : vector<2x1xf32> to vector<2x16xf32>
    %140 = arith.subf %136, %139 : vector<2x16xf32>
    %141 = math.exp %140 : vector<2x16xf32>
    %cst_54 = arith.constant dense<0.000000e+00> : vector<2xf32>
    %142 = vector.multi_reduction <add>, %141, %cst_54 [1] : vector<2x16xf32> to vector<2xf32>
    %143 = vector.shape_cast %142 : vector<2xf32> to vector<2x1xf32>
    %144 = math.log %143 : vector<2x1xf32>
    %145 = vector.broadcast %144 : vector<2x1xf32> to vector<2x16xf32>
    %146 = arith.subf %140, %145 : vector<2x16xf32>
    %cst_55 = arith.constant 0.000000e+00 : f32
    %147 = vector.broadcast %cst_55 : f32 to vector<2x80xf32>
    %148 = tpu.concatenate %129, %146, %147 in 1 : vector<2x32xf32>, vector<2x16xf32>, vector<2x80xf32> -> vector<2x128xf32>
    %c0_56 = arith.constant 0 : index
    %c0_57 = arith.constant 0 : index
    %149 = vector.load %arg4[%c0_56, %c0_57] : memref<2x128xf32, #tpu.memory_space<vmem>>, vector<2x128xf32>
    tpu.vector_store %arg4[%c0_56, %c0_57], %148 {strides = array<i32>} : memref<2x128xf32, #tpu.memory_space<vmem>>, vector<2x128xf32>,
    return
  }
}

</mosaic_0001>

<bundles_post_ra>
// kernel: _lambda_.1
= control target key start
LH: loop header
LB: loop body
LE: loop exit
PB: predicated region body
PF: predicated region fallthrough
CT: control target
= control target key end

     0   :  { %9 = vsyncpa [#allocation3], 0  ;;  %s1225_s15 = smov [#allocation2]   ;;  %s1394_s0 = inlined_call_operand.vmem [shape: f32[16,32], index: 0, kind: input, shape index: {}]   ;;  %s1395_s1 = inlined_call_operand.vmem [shape: f32[16,32], index: 1, kind: input, shape index: {}]   ;;  %s1396_s2 = inlined_call_operand.hbm [shape: f32[440,128], index: 2, kind: input, shape index: {}]   ;;  %s1397_s3 = inlined_call_operand.vmem [shape: f32[8,128], index: 3, kind: input, shape index: {}]   ;;  %s1398_s4 = inlined_call_operand.vmem [shape: f32[2,128], index: 4, kind: output, shape index: {}]  }
   0x1   :  { %s19_s16 = sshll.u32 %s1225_s15, 4  ;;  %s20_s16 = int_to_ptr.vmem [resolvable:$true] %s19_s16 }
   0x2   :  { %s1211_s17 = scalar_lea.vmem %s20_s16, 7040  ;;  %p1216_p1 = scmp.lt.s32.totalorder %s20_s16, %s20_s16 }
   0x3   :  { %p1212_p0 = scmp.ne.s32.totalorder %s20_s16, %s1211_s17  ;;  %p1217_p2 = scmp.lt.s32.totalorder %s1211_s17, %s1211_s17 }
   0x5   :  { %p1218_p3 = por %p1217_p2, %p1216_p1 }
   0x7   :  { %p1219_p4 = pnand %p1218_p3, %p1212_p0 }
   0x9   :  { %1222 = shalt.err (!%p1219_p4)
}
   0xa   :  { %s1226_s18 = smov 128   ;;  %s1227_s19 = smov 8  }
   0xb   :  { %25 = dma.hbm_to_vmem [thread:$0]  %s1396_s2, 7040, %s20_s16, [#allocation3], %s1226_s18, %s1226_s18, %s1227_s19  }
   0xc   :  { %1223 = dma.done.wait [#allocation3], 7040  }
   0xd   :  { %1224 = vsyncadd [#allocation3], 4294960256  ;;  %v1228_v0 = vmov 0.0   ;;  %vm1229_vm0 = vmmov 0   ;;  %v46_v1 = vld [vmem:[#allocation2 + $0x30] sm:$0xff]  ;;  %v47_v2 = vld [vmem:[#allocation2 + $0x38] sm:$0xff] }
   0xe   :  { %1069 = vmatprep.subr.bf16.mxu0 %v1228_v0  ;;  %1077 = vmatprep.subr.bf16.mxu1 %v1228_v0  ;;  %v40_v3 = vld [vmem:[#allocation2 + $0x10] sm:$0xff]  ;;  %v49_v4 = vpack.c.bf16 %v47_v2, %v46_v1  ;;  %v41_v5 = vld [vmem:[#allocation2 + $0x18] sm:$0xff]  ;;  %v44_v6 = vld [vmem:[#allocation2 + $0x20] sm:$0xff]  ;;  %vm50_vm1 = vcmask 261120   ;;  %vm154_vm2 = vcmask 523264   ;;  %vm264_vm3 = vcmask 1043456  }
   0xf   :  { %1073 = vmatprep.mubr.msk.bf16.mxu0 %vm1229_vm0, %v1228_v0  ;;  %1081 = vmatprep.mubr.msk.bf16.mxu1 %vm1229_vm0, %v1228_v0  ;;  %v45_v7 = vld [vmem:[#allocation2 + $0x28] sm:$0xff]  ;;  %v43_v8 = vpack.c.bf16 %v41_v5, %v40_v3  ;;  %v38_v9 = vld [vmem:[#allocation2] sm:$0xff]  ;;  %v145_v17 = vld [vmem:[#allocation2 + $0x70] sm:$0xff]  ;;  %vm203_vm4 = vcmask 195584   ;;  %vm231_vm5 = vcmask 1041408   ;;  %vm246_vm6 = vcmask 1046528  }
  0x10   :  { %v39_v10 = vld [vmem:[#allocation2 + $0x8] sm:$0xff]  ;;  %1070 = vmatpush3.bf16.msra.mxu0 %v49_v4  ;;  %v48_v11 = vpack.c.bf16 %v45_v7, %v44_v6  ;;  %v35_v12 = vld [vmem:[%s1395_s1] sm:$0xff]  ;;  %v146_v18 = vld [vmem:[#allocation2 + $0x78] sm:$0xff]  ;;  %vm356_vm7 = vcmask 1045504   ;;  %vm420_vm8 = vcmask 1044480   ;;  %vm561_vm9 = vcmask 1040384  }
  0x11   :  { %v36_v13 = vld [vmem:[%s1395_s1 + $0x8] sm:$0xff]  ;;  %v32_v14 = vld [vmem:[%s1394_s0] sm:$0xff]  ;;  %1078 = vmatpush3.bf16.msra.mxu1 %v43_v8  ;;  %1071 = vmatprep.subr.bf16.mxu0 %v1228_v0  ;;  %v42_v15 = vpack.c.bf16 %v39_v10, %v38_v9  ;;  %v150_v21 = vpack.c.bf16 %v146_v18, %v145_v17  ;;  %v141_v25 = vld [vmem:[#allocation2 + $0x50] sm:$0xff]  ;;  %vm826_vm10 = vcmask 1041409   ;;  %vm981_vm15 = vcmask 123904  }
  0x12   :  { %v33_v16 = vld [vmem:[%s1394_s0 + $0x8] sm:$0xff]  ;;  %1079 = vmatprep.subr.bf16.mxu1 %v1228_v0  ;;  %v37_v19 = vpack.c.bf16 %v36_v13, %v35_v12  ;;  %v143_v22 = vld [vmem:[#allocation2 + $0x60] sm:$0xff]  ;;  %v142_v26 = vld [vmem:[#allocation2 + $0x58] sm:$0xff] }
  0x13   :  { %v34_v20 = vpack.c.bf16 %v33_v16, %v32_v14  ;;  %v144_v23 = vld [vmem:[#allocation2 + $0x68] sm:$0xff]  ;;  %v148_v27 = vpack.c.bf16 %v142_v26, %v141_v25  ;;  %v139_v28 = vld [vmem:[#allocation2 + $0x40] sm:$0xff]  ;;  %v256_v50 = vld [vmem:[#allocation2 + $0x98] sm:$0xff] }
  0x14   :  { %1072 = vmatpush3.bf16.msra.mxu0 %v48_v11  ;;  %v149_v24 = vpack.c.bf16 %v144_v23, %v143_v22  ;;  %v140_v29 = vld [vmem:[#allocation2 + $0x48] sm:$0xff]  ;;  %v368_v45 = vld [vmem:[#allocation2 + $0xc0] sm:$0xff]  ;;  %v366_v52 = vld [vmem:[#allocation2 + $0xb0] sm:$0xff] }
  0x15   :  { %1080 = vmatpush3.bf16.msra.mxu1 %v42_v15  ;;  %1085 = vmatprep.subr.bf16.mxu0 %v1228_v0  ;;  %v147_v30 = vpack.c.bf16 %v140_v29, %v139_v28  ;;  %v258_v44 = vld [vmem:[#allocation2 + $0xa8] sm:$0xff]  ;;  %v370_v47 = vpack.c.bf16 %v368_v45, %v368_v45  ;;  %v257_v51 = vld [vmem:[#allocation2 + $0xa0] sm:$0xff]  ;;  %v367_v54 = vld [vmem:[#allocation2 + $0xb8] sm:$0xff] }
  0x16   :  { %1097 = vmatprep.subr.bf16.mxu1 %v1228_v0  ;;  %v260_v46 = vpack.c.bf16 %v258_v44, %v258_v44  ;;  %v259_v53 = vpack.c.bf16 %v257_v51, %v256_v50  ;;  %v369_v55 = vpack.c.bf16 %v367_v54, %v366_v52  ;;  %v495_v25 = vld [vmem:[#allocation2 + $0xf0] sm:$0xff]  ;;  %v494_v50 = vld [vmem:[#allocation2 + $0xe8] sm:$0xff] }
  0x17   :  { %1074 = vmatmul.mubr.msk.bf16.vlgmr.msra.gmra.mxu0 %vm50_vm1, %v37_v19  ;;  %v375_v49 = vsel %vm264_vm3, %v370_v47, 0 }
  0x18   :  { %1082 = vmatmul.mubr.msk.bf16.vlgmr.msra.gmra.mxu1 %vm50_vm1, %v34_v20  ;;  %1086 = vmatpush3.bf16.msra.mxu0 %v150_v21  ;;  %v266_v48 = vsel %vm264_vm3, %v260_v46, 0 }
  0x19   :  { %1087 = vmatprep.subr.bf16.mxu0 %v1228_v0  ;;  %1093 = vmatprep.mubr.msk.bf16.mxu0 %vm1229_vm0, %v1228_v0 }
  0x1a   :  { %1101 = vmatprep.mubr.msk.bf16.mxu1 %vm1229_vm0, %v1228_v0  ;;  %1098 = vmatpush3.bf16.msra.mxu1 %v266_v48  ;;  %v238_v48 = vld [vmem:[#allocation2 + $0x88] sm:$0xff] }
  0x1b   :  { %1099 = vmatprep.subr.bf16.mxu1 %v1228_v0 }
  0x1c   :  { %1088 = vmatpush3.bf16.msra.mxu0 %v149_v24  ;;  %v239_v24 = vld [vmem:[#allocation2 + $0x90] sm:$0xff] }
  0x1d   :  { %1089 = vmatprep.subr.bf16.mxu0 %v1228_v0 }
  0x1e   :  { %1100 = vmatpush3.bf16.msra.mxu1 %v259_v53  ;;  %v432_v53 = vld [vmem:[#allocation2 + $0xd8] sm:$0xff] }
  0x1f   :  { %1105 = vmatprep.subr.bf16.mxu1 %v1228_v0 }
  0x20   :  { %1090 = vmatpush3.bf16.msra.mxu0 %v148_v27 }
  0x21   :  { %1091 = vmatprep.subr.bf16.mxu0 %v1228_v0 }
  0x24   :  { %1092 = vmatpush3.bf16.msra.mxu0 %v147_v30 }
  0x25   :  { %1113 = vmatprep.subr.bf16.mxu0 %v1228_v0 }
  0xd7   :  { %v88_v31 = vpop.f32.mrf.mxu0 }
  0xd8   :  { %v132_v32 = vpop.f32.mrf.mxu1 }
  0xd9   :  { %v1075_v33 = vpop.f32.mrf.mxu0  ;;  %v133_v35 = vadd.f32 %v132_v32, %v88_v31 }
  0xda   :  { %v1083_v34 = vpop.f32.mrf.mxu1  ;;  %v241_v33 = vpack.c.bf16 %v239_v24, %v239_v24 }
  0xdb   :  { %v91_v36 = vpop.f32.mrf.mxu0  ;;  %v151_v41 = vmul.f32 %v133_v35, %v133_v35  ;;  %v497_v34 = vpack.c.bf16 %v495_v25, %v495_v25 }
  0xdc   :  { %v135_v37 = vpop.f32.mrf.mxu1  ;;  %v313_v45 = vsel %vm264_vm3, %v241_v33, 0 }
  0xdd   :  { %v136_v38 = vadd.f32 %v135_v37, %v91_v36  ;;  %v1076_v39 = vpop.f32.mrf.mxu0  ;;  %v502_v47 = vsel %vm264_vm3, %v497_v34, 0 }
  0xde   :  { %v1084_v40 = vpop.f32.mrf.mxu1 }
  0xdf   :  { %v152_v42 = vmul.f32 %v136_v38, %v136_v38 }
  0xe1   :  { %v153_v43 = vpack.c.bf16 %v152_v42, %v151_v41 }
  0xe3   :  { %1094 = vmatmul.mubr.msk.bf16.vlgmr.msra.gmra.mxu0 %vm154_vm2, %v153_v43  ;;  %v237_v43 = vld [vmem:[#allocation2 + $0x80] sm:$0xff] }
  0xe4   :  { %1117 = vmatprep.mubr.msk.bf16.mxu0 %vm1229_vm0, %v1228_v0  ;;  %1114 = vmatpush3.bf16.msra.mxu0 %v375_v49  ;;  %v493_v49 = vld [vmem:[#allocation2 + $0xe0] sm:$0xff] }
  0xe5   :  { %1115 = vmatprep.subr.bf16.mxu0 %v1228_v0 }
  0xe8   :  { %1116 = vmatpush3.bf16.msra.mxu0 %v369_v55 }
  0xe9   :  { %1129 = vmatprep.subr.bf16.mxu0 %v1228_v0 }
 0x1a3   :  { %v192_v56 = vpop.f32.mrf.mxu0 }
 0x1a4   :  { %v193_v57 = vadd.f32 1e-06, %v192_v56  ;;  %v240_v56 = vpack.c.bf16 %v238_v48, %v237_v43 }
 0x1a5   :  { %v1095_v58 = vpop.f32.mrf.mxu0 }
 0x1a6   :  { %1191 = vlog2.f32 %v193_v57  ;;  %v496_v57 = vpack.c.bf16 %v494_v50, %v493_v49  ;;  %v434_v58 = vpack.c.bf16 %v432_v53, %v432_v53 }
 0x1a7   :  { %v195_v59 = vpop.f32.mrf.mxu0 }
 0x1a8   :  { %v196_v60 = vadd.f32 1e-06, %v195_v59 }
 0x1a9   :  { %v1096_v61 = vpop.f32.mrf.mxu0 }
 0x1aa   :  { %1193 = vlog2.f32 %v196_v60 }
 0x1b3   :  { %v1192_v62 = vpop.eup %1191 }
 0x1b4   :  { %v200_v63 = vmul.f32 0.6931472, %v1192_v62  ;;  %v439_v62 = vsel %vm264_vm3, %v434_v58, 0 }
 0x1b6   :  { %v204_v1 = vsel %vm203_vm4, %v200_v63, 0.0 }
 0x1b7   :  { %v1194_v2 = vpop.eup %1193  ;;  %v205_v3 = vrot.slane %v204_v1, 4 }
 0x1b8   :  { %v202_v4 = vmul.f32 0.6931472, %v1194_v2  ;;  %v431_v2 = vld [vmem:[#allocation2 + $0xd0] sm:$0xff] }
 0x1b9   :  { %v206_v5 = vadd.f32 %v205_v3, %v204_v1  ;;  %v430_v1 = vld [vmem:[#allocation2 + $0xc8] sm:$0xff] }
 0x1ba   :  { %v211_v6 = vsel %vm203_vm4, %v202_v4, 0.0 }
 0x1bb   :  { %v207_v7 = vrot.slane %v206_v5, 2  ;;  %v212_v8 = vrot.slane %v211_v6, 4 }
 0x1bd   :  { %v208_v9 = vadd.f32 %v207_v7, %v206_v5  ;;  %v213_v10 = vadd.f32 %v212_v8, %v211_v6  ;;  %v433_v7 = vpack.c.bf16 %v431_v2, %v430_v1  ;;  %v691_v1 = vld [vmem:[#allocation2 + $0x148] sm:$0xff]  ;;  %v692_v2 = vld [vmem:[#allocation2 + $0x150] sm:$0xff] }
 0x1bf   :  { %v209_v11 = vrot.slane %v208_v9, 1  ;;  %v214_v12 = vrot.slane %v213_v10, 2 }
 0x1c1   :  { %v210_v13 = vadd.f32 %v209_v11, %v208_v9  ;;  %v215_v14 = vadd.f32 %v214_v12, %v213_v10  ;;  %v569_v11 = vld [vmem:[#allocation2 + $0x108] sm:$0xff]  ;;  %v570_v12 = vld [vmem:[#allocation2 + $0x110] sm:$0xff] }
 0x1c3   :  { %v219_v15 = vmul.f32 0.125, %v210_v13  ;;  %v216_v16 = vrot.slane %v215_v14, 1  ;;  %v572_v13 = vpack.c.bf16 %v570_v12, %v569_v11  ;;  %v690_v11 = vld [vmem:[#allocation2 + $0x140] sm:$0xff] }
 0x1c5   :  { %v221_v17 = vsub.f32 %v200_v63, %v219_v15  ;;  %v217_v18 = vadd.f32 %v216_v16, %v215_v14  ;;  %v588_v14 = vld [vmem:[#allocation2 + $0x128] sm:$0xff]  ;;  %v589_v15 = vld [vmem:[#allocation2 + $0x130] sm:$0xff] }
 0x1c6   :  { %v591_v16 = vpack.c.bf16 %v589_v15, %v588_v14 }
 0x1c7   :  { %v227_v19 = vrot.slane %v221_v17, 6  ;;  %v220_v20 = vmul.f32 0.125, %v217_v18  ;;  %v567_v17 = vld [vmem:[#allocation2 + $0xf8] sm:$0xff]  ;;  %v568_v18 = vld [vmem:[#allocation2 + $0x100] sm:$0xff] }
 0x1c9   :  { %v222_v21 = vsub.f32 %v202_v4, %v220_v20  ;;  %v1301_v22 = vsel %vm231_vm5, 0.0, %v227_v19  ;;  %v1303_v23 = vsel %vm231_vm5, %v227_v19, 0.0  ;;  %v571_v19 = vpack.c.bf16 %v568_v18, %v567_v17  ;;  %v586_v20 = vld [vmem:[#allocation2 + $0x118] sm:$0xff] }
 0x1ca   :  { %v247_v27 = vrot.slane %v1301_v22, 1  ;;  %v248_v28 = vrot.slane %v1303_v23, 1  ;;  %v357_v29 = vrot.slane %v1301_v22, 2  ;;  %v358_v30 = vrot.slane %v1303_v23, 2 }
 0x1cb   :  { %v228_v26 = vrot.slane %v222_v21, 6  ;;  %v484_v54 = vrot.slane %v1301_v22, 4  ;;  %v485_v55 = vrot.slane %v1303_v23, 4  ;;  %v421_v5 = vrot.slane %v1301_v22, 3  ;;  %v587_v21 = vld [vmem:[#allocation2 + $0x120] sm:$0xff] }
 0x1cc   :  { %v249_v39 = vsel %vm246_vm6, %v247_v27, %v248_v28  ;;  %v359_v41 = vsel %vm356_vm7, %v357_v29, %v358_v30  ;;  %v422_v6 = vrot.slane %v1303_v23, 3 }
 0x1cd   :  { %v233_v31 = vsel %vm231_vm5, 0.0, %v228_v26  ;;  %v235_v32 = vsel %vm231_vm5, %v228_v26, 0.0  ;;  %v486_v60 = vsel %vm264_vm3, %v484_v54, %v485_v55 }
 0x1ce   :  { %v250_v35 = vrot.slane %v233_v31, 1  ;;  %v251_v36 = vrot.slane %v235_v32, 1  ;;  %v360_v37 = vrot.slane %v233_v31, 2  ;;  %v361_v38 = vrot.slane %v235_v32, 2 }
 0x1cf   :  { %v487_v51 = vrot.slane %v233_v31, 4  ;;  %v488_v52 = vrot.slane %v235_v32, 4  ;;  %v236_v61 = vpack.c.bf16 %v233_v31, %v1301_v22  ;;  %v424_v3 = vrot.slane %v233_v31, 3 }
 0x1d0   :  { %v252_v40 = vsel %vm246_vm6, %v250_v35, %v251_v36  ;;  %v362_v42 = vsel %vm356_vm7, %v360_v37, %v361_v38  ;;  %v425_v4 = vrot.slane %v235_v32, 3  ;;  %v423_v9 = vsel %vm420_vm8, %v421_v5, %v422_v6 }
 0x1d1   :  { %v255_v44 = vpack.c.bf16 %v252_v40, %v249_v39  ;;  %v365_v46 = vpack.c.bf16 %v362_v42, %v359_v41  ;;  %v489_v59 = vsel %vm264_vm3, %v487_v51, %v488_v52  ;;  %v590_v22 = vpack.c.bf16 %v587_v21, %v586_v20  ;;  %v807_v20 = vld [vmem:[#allocation2 + $0x168] sm:$0xff]  ;;  %v808_v21 = vld [vmem:[#allocation2 + $0x170] sm:$0xff] }
 0x1d2   :  { %v492_v63 = vpack.c.bf16 %v489_v59, %v486_v60  ;;  %v426_v8 = vsel %vm420_vm8, %v424_v3, %v425_v4 }
 0x1d3   :  { %1102 = vmatmul.mubr.msk.bf16.vlgmr.msra.gmra.mxu1 %vm203_vm4, %v255_v44  ;;  %1118 = vmatmul.mubr.msk.bf16.vlgmr.msra.gmra.mxu0 %vm203_vm4, %v365_v46  ;;  %v429_v10 = vpack.c.bf16 %v426_v8, %v423_v9  ;;  %v1015_v44 = vld [vmem:[%s1397_s3] ss:$0 sm:$0xff]  ;;  %v694_v8 = vpack.c.bf16 %v692_v2, %v691_v1 }
 0x1d4   :  { %1106 = vmatpush3.bf16.msra.mxu1 %v313_v45  ;;  %1130 = vmatpush3.bf16.msra.mxu0 %v502_v47 }
 0x1d5   :  { %1107 = vmatprep.subr.bf16.mxu1 %v1228_v0  ;;  %1131 = vmatprep.subr.bf16.mxu0 %v1228_v0 }
 0x1d6   :  { %1109 = vmatprep.mubr.msk.bf16.mxu1 %vm1229_vm0, %v1228_v0  ;;  %1133 = vmatprep.mubr.msk.bf16.mxu0 %vm1229_vm0, %v1228_v0 }
 0x1d8   :  { %1108 = vmatpush3.bf16.msra.mxu1 %v240_v56  ;;  %1132 = vmatpush3.bf16.msra.mxu0 %v496_v57 }
 0x1d9   :  { %1121 = vmatprep.subr.bf16.mxu1 %v1228_v0  ;;  %1145 = vmatprep.subr.bf16.mxu0 %v1228_v0 }
 0x1db   :  { %1110 = vmatmul.mubr.msk.bf16.vlgmr.msra.gmra.mxu1 %vm203_vm4, %v236_v61  ;;  %1134 = vmatmul.mubr.msk.bf16.vlgmr.msra.gmra.mxu0 %vm203_vm4, %v492_v63 }
 0x1dc   :  { %1122 = vmatpush3.bf16.msra.mxu1 %v439_v62  ;;  %1125 = vmatprep.mubr.msk.bf16.mxu1 %vm1229_vm0, %v1228_v0 }
 0x1dd   :  { %1123 = vmatprep.subr.bf16.mxu1 %v1228_v0  ;;  %1149 = vmatprep.mubr.msk.bf16.mxu0 %vm1229_vm0, %v1228_v0 }
 0x1de   :  { %1146 = vmatpush3.bf16.msra.mxu0 %v572_v13 }
 0x1df   :  { %1147 = vmatprep.subr.bf16.mxu0 %v1228_v0 }
 0x1e0   :  { %1124 = vmatpush3.bf16.msra.mxu1 %v433_v7 }
 0x1e1   :  { %1137 = vmatprep.subr.bf16.mxu1 %v1228_v0 }
 0x1e2   :  { %1148 = vmatpush3.bf16.msra.mxu0 %v571_v19 }
 0x1e3   :  { %1126 = vmatmul.mubr.msk.bf16.vlgmr.msra.gmra.mxu1 %vm203_vm4, %v429_v10  ;;  %1161 = vmatprep.subr.bf16.mxu0 %v1228_v0  ;;  %v689_v10 = vld [vmem:[#allocation2 + $0x138] sm:$0xff] }
 0x1e4   :  { %1141 = vmatprep.mubr.msk.bf16.mxu1 %vm1229_vm0, %v1228_v0  ;;  %1138 = vmatpush3.bf16.msra.mxu1 %v591_v16  ;;  %v693_v16 = vpack.c.bf16 %v690_v11, %v689_v10 }
 0x1e5   :  { %1139 = vmatprep.subr.bf16.mxu1 %v1228_v0 }
 0x1e8   :  { %1140 = vmatpush3.bf16.msra.mxu1 %v590_v22  ;;  %v810_v22 = vpack.c.bf16 %v808_v21, %v807_v20 }
 0x1e9   :  { %1153 = vmatprep.subr.bf16.mxu1 %v1228_v0 }
 0x293   :  { %v302_v23 = vpop.f32.mrf.mxu1  ;;  %v411_v24 = vpop.f32.mrf.mxu0 }
 0x295   :  { %v1103_v25 = vpop.f32.mrf.mxu1  ;;  %v1119_v26 = vpop.f32.mrf.mxu0 }
 0x296   :  { %v813_v26 = vld [vmem:[#allocation2 + $0x188] sm:$0xff] }
 0x297   :  { %v305_v27 = vpop.f32.mrf.mxu1  ;;  %v414_v28 = vpop.f32.mrf.mxu0 }
 0x299   :  { %v1104_v29 = vpop.f32.mrf.mxu1  ;;  %v1120_v30 = vpop.f32.mrf.mxu0 }
 0x29a   :  { %v812_v30 = vld [vmem:[#allocation2 + $0x180] sm:$0xff] }
 0x29b   :  { %v349_v31 = vpop.f32.mrf.mxu1  ;;  %v538_v32 = vpop.f32.mrf.mxu0 }
 0x29c   :  { %v350_v35 = vadd.f32 %v349_v31, %v302_v23  ;;  %v805_v23 = vld [vmem:[#allocation2 + $0x158] sm:$0xff] }
 0x29d   :  { %v1111_v33 = vpop.f32.mrf.mxu1  ;;  %v1135_v34 = vpop.f32.mrf.mxu0 }
 0x29e   :  { %v418_v41 = vadd.f32 %v411_v24, %v350_v35  ;;  %v806_v24 = vld [vmem:[#allocation2 + $0x160] sm:$0xff] }
 0x29f   :  { %v352_v36 = vpop.f32.mrf.mxu1  ;;  %v541_v37 = vpop.f32.mrf.mxu0  ;;  %v809_v25 = vpack.c.bf16 %v806_v24, %v805_v23 }
 0x2a0   :  { %v353_v40 = vadd.f32 %v352_v36, %v305_v27  ;;  %v814_v27 = vld [vmem:[#allocation2 + $0x190] sm:$0xff] }
 0x2a1   :  { %v1112_v38 = vpop.f32.mrf.mxu1  ;;  %v1136_v39 = vpop.f32.mrf.mxu0  ;;  %v816_v29 = vpack.c.bf16 %v814_v27, %v813_v26 }
 0x2a2   :  { %v419_v47 = vadd.f32 %v414_v28, %v353_v40  ;;  %v811_v28 = vld [vmem:[#allocation2 + $0x178] sm:$0xff] }
 0x2a3   :  { %v475_v42 = vpop.f32.mrf.mxu1  ;;  %v815_v31 = vpack.c.bf16 %v812_v30, %v811_v28 }
 0x2a4   :  { %v482_v43 = vadd.f32 %v475_v42, %v418_v41  ;;  %v1019_v41 = vld [vmem:[%s1397_s3 + $0x1] ss:$0 sm:$0xff] }
 0x2a5   :  { %v1127_v45 = vpop.f32.mrf.mxu1 }
 0x2a6   :  { %v545_v46 = vadd.f32 %v538_v32, %v482_v43 }
 0x2a7   :  { %v478_v48 = vpop.f32.mrf.mxu1 }
 0x2a8   :  { %v551_v49 = vadd.f32 %v1015_v44, %v545_v46  ;;  %v483_v50 = vadd.f32 %v478_v48, %v419_v47 }
 0x2a9   :  { %v1128_v51 = vpop.f32.mrf.mxu1 }
 0x2aa   :  { %v553_v52 = vmax.f32 %v551_v49, 0.0  ;;  %v546_v53 = vadd.f32 %v541_v37, %v483_v50 }
 0x2ac   :  { %v557_v54 = vrot.slane %v553_v52, 7  ;;  %v552_v55 = vadd.f32 %v1015_v44, %v546_v53 }
 0x2ae   :  { %v562_v56 = vsel %vm561_vm9, 0.0, %v557_v54  ;;  %v564_v57 = vsel %vm561_vm9, %v557_v54, 0.0  ;;  %v554_v58 = vmax.f32 %v552_v55, 0.0 }
 0x2af   :  { %v577_v60 = vrot.slane %v562_v56, 1  ;;  %v578_v61 = vrot.slane %v564_v57, 1  ;;  %v680_v14 = vrot.slane %v562_v56, 2  ;;  %v681_v15 = vrot.slane %v564_v57, 2 }
 0x2b0   :  { %v558_v59 = vrot.slane %v554_v58, 7 }
 0x2b1   :  { %v579_v6 = vsel %vm246_vm6, %v577_v60, %v578_v61  ;;  %v682_v18 = vsel %vm356_vm7, %v680_v14, %v681_v15 }
 0x2b2   :  { %v563_v62 = vsel %vm561_vm9, 0.0, %v558_v59  ;;  %v565_v63 = vsel %vm561_vm9, %v558_v59, 0.0 }
 0x2b3   :  { %v566_v3 = vpack.c.bf16 %v563_v62, %v562_v56  ;;  %v580_v4 = vrot.slane %v563_v62, 1  ;;  %v581_v5 = vrot.slane %v565_v63, 1  ;;  %v683_v12 = vrot.slane %v563_v62, 2 }
 0x2b4   :  { %v684_v13 = vrot.slane %v565_v63, 2 }
 0x2b5   :  { %1150 = vmatmul.mubr.msk.bf16.vlgmr.msra.gmra.mxu0 %vm50_vm1, %v566_v3  ;;  %v582_v7 = vsel %vm246_vm6, %v580_v4, %v581_v5 }
 0x2b6   :  { %v585_v9 = vpack.c.bf16 %v582_v7, %v579_v6  ;;  %1165 = vmatprep.mubr.msk.bf16.mxu0 %vm1229_vm0, %v1228_v0  ;;  %v685_v17 = vsel %vm356_vm7, %v683_v12, %v684_v13  ;;  %1162 = vmatpush3.bf16.msra.mxu0 %v816_v29 }
 0x2b7   :  { %v688_v19 = vpack.c.bf16 %v685_v17, %v682_v18  ;;  %1163 = vmatprep.subr.bf16.mxu0 %v1228_v0 }
 0x2b8   :  { %1142 = vmatmul.mubr.msk.bf16.vlgmr.msra.gmra.mxu1 %vm50_vm1, %v585_v9 }
 0x2b9   :  { %1154 = vmatpush3.bf16.msra.mxu1 %v694_v8  ;;  %1157 = vmatprep.mubr.msk.bf16.mxu1 %vm1229_vm0, %v1228_v0 }
 0x2ba   :  { %1155 = vmatprep.subr.bf16.mxu1 %v1228_v0  ;;  %1164 = vmatpush3.bf16.msra.mxu0 %v815_v31 }
 0x2bb   :  { %1177 = vmatprep.subr.bf16.mxu0 %v1228_v0 }
 0x2bd   :  { %1156 = vmatpush3.bf16.msra.mxu1 %v693_v16 }
 0x2be   :  { %1169 = vmatprep.subr.bf16.mxu1 %v1228_v0 }
 0x2c0   :  { %1158 = vmatmul.mubr.msk.bf16.vlgmr.msra.gmra.mxu1 %vm50_vm1, %v688_v19 }
 0x2c1   :  { %1173 = vmatprep.mubr.msk.bf16.mxu1 %vm1229_vm0, %v1228_v0  ;;  %1170 = vmatpush3.bf16.msra.mxu1 %v810_v22 }
 0x2c2   :  { %1171 = vmatprep.subr.bf16.mxu1 %v1228_v0 }
 0x2c5   :  { %1172 = vmatpush3.bf16.msra.mxu1 %v809_v25 }
 0x375   :  { %v673_v32 = vpop.f32.mrf.mxu0 }
 0x377   :  { %v1151_v33 = vpop.f32.mrf.mxu0 }
 0x378   :  { %v629_v34 = vpop.f32.mrf.mxu1 }
 0x379   :  { %v676_v35 = vpop.f32.mrf.mxu0  ;;  %v674_v40 = vadd.f32 %v673_v32, %v629_v34 }
 0x37a   :  { %v1143_v36 = vpop.f32.mrf.mxu1 }
 0x37b   :  { %v1152_v37 = vpop.f32.mrf.mxu0 }
 0x37c   :  { %v632_v38 = vpop.f32.mrf.mxu1 }
 0x37d   :  { %v677_v45 = vadd.f32 %v676_v35, %v632_v38 }
 0x37e   :  { %v1144_v39 = vpop.f32.mrf.mxu1 }
 0x380   :  { %v732_v42 = vpop.f32.mrf.mxu1 }
 0x381   :  { %v739_v43 = vadd.f32 %v732_v42, %v674_v40 }
 0x382   :  { %v1159_v44 = vpop.f32.mrf.mxu1 }
 0x383   :  { %v745_v46 = vadd.f32 %v1019_v41, %v739_v43 }
 0x384   :  { %v735_v47 = vpop.f32.mrf.mxu1 }
 0x385   :  { %v747_v48 = vmax.f32 %v745_v46, 0.0  ;;  %v740_v49 = vadd.f32 %v735_v47, %v677_v45 }
 0x386   :  { %v1160_v50 = vpop.f32.mrf.mxu1 }
 0x387   :  { %v749_v51 = vsel %vm50_vm1, %v747_v48, 0.0  ;;  %v765_v52 = vmul.f32 %v747_v48, %v747_v48  ;;  %v746_v53 = vadd.f32 %v1019_v41, %v740_v49 }
 0x388   :  { %v750_v54 = vrot.slane %v749_v51, 4 }
 0x389   :  { %v767_v55 = vsel %vm50_vm1, %v765_v52, 0.0  ;;  %v748_v56 = vmax.f32 %v746_v53, 0.0 }
 0x38a   :  { %v751_v57 = vadd.f32 %v750_v54, %v749_v51  ;;  %v768_v58 = vrot.slane %v767_v55, 4  ;;  %v928_v54 = vld [vmem:[#allocation2 + $0x1a8] sm:$0xff] }
 0x38b   :  { %v756_v59 = vsel %vm50_vm1, %v748_v56, 0.0  ;;  %v766_v60 = vmul.f32 %v748_v56, %v748_v56 }
 0x38c   :  { %v752_v61 = vrot.slane %v751_v57, 2  ;;  %v769_v62 = vadd.f32 %v768_v58, %v767_v55  ;;  %v757_v63 = vrot.slane %v756_v59, 4  ;;  %v929_v55 = vld [vmem:[#allocation2 + $0x1b0] sm:$0xff]  ;;  %v927_v58 = vld [vmem:[#allocation2 + $0x1a0] sm:$0xff] }
 0x38d   :  { %v774_v1 = vsel %vm50_vm1, %v766_v60, 0.0  ;;  %v931_v56 = vpack.c.bf16 %v929_v55, %v928_v54 }
 0x38e   :  { %v753_v2 = vadd.f32 %v752_v61, %v751_v57  ;;  %v770_v3 = vrot.slane %v769_v62, 2  ;;  %v758_v4 = vadd.f32 %v757_v63, %v756_v59  ;;  %v775_v5 = vrot.slane %v774_v1, 4  ;;  %v926_v57 = vld [vmem:[#allocation2 + $0x198] sm:$0xff] }
 0x38f   :  { %v930_v59 = vpack.c.bf16 %v927_v58, %v926_v57 }
 0x390   :  { %v754_v6 = vrot.slane %v753_v2, 1  ;;  %v771_v7 = vadd.f32 %v770_v3, %v769_v62  ;;  %v759_v8 = vrot.slane %v758_v4, 2  ;;  %v776_v9 = vadd.f32 %v775_v5, %v774_v1  ;;  %v1022_v1 = vld [vmem:[%s1397_s3 + $0x2] ss:$0 sm:$0xff] }
 0x392   :  { %v755_v10 = vadd.f32 %v754_v6, %v753_v2  ;;  %v772_v11 = vrot.slane %v771_v7, 1  ;;  %v760_v12 = vadd.f32 %v759_v8, %v758_v4  ;;  %v777_v13 = vrot.slane %v776_v9, 2 }
 0x394   :  { %v763_v14 = vmul.f32 0.125, %v755_v10  ;;  %v773_v15 = vadd.f32 %v772_v11, %v771_v7  ;;  %v761_v16 = vrot.slane %v760_v12, 1  ;;  %v778_v17 = vadd.f32 %v777_v13, %v776_v9 }
 0x396   :  { %v781_v18 = vmul.f32 0.125, %v773_v15  ;;  %v783_v19 = vmul.f32 %v763_v14, %v763_v14  ;;  %v762_v20 = vadd.f32 %v761_v16, %v760_v12  ;;  %v779_v21 = vrot.slane %v778_v17, 1 }
 0x397   :  { %v818_v23 = vpack.c.bf16 %v763_v14, %v763_v14 }
 0x398   :  { %v785_v22 = vsub.f32 %v781_v18, %v783_v19  ;;  %v764_v24 = vmul.f32 0.125, %v762_v20  ;;  %v780_v25 = vadd.f32 %v779_v21, %v778_v17 }
 0x399   :  { %v874_v31 = vunpack.c.l.b16 %v818_v23 }
 0x39a   :  { %v787_v26 = vmax.f32 %v785_v22, 0.0  ;;  %v784_v27 = vmul.f32 %v764_v24, %v764_v24  ;;  %v819_v28 = vpack.c.bf16 %v764_v24, %v764_v24  ;;  %v782_v29 = vmul.f32 0.125, %v780_v25 }
 0x39c   :  { %v789_v30 = vadd.f32 1e-06, %v787_v26  ;;  %v875_v32 = vunpack.c.l.b16 %v819_v28  ;;  %v786_v33 = vsub.f32 %v782_v29, %v784_v27 }
 0x39e   :  { %1195 = vrsqrt.f32 %v789_v30  ;;  %v876_v34 = vsel %vm826_vm10, %v875_v32, %v874_v31  ;;  %v788_v35 = vmax.f32 %v786_v33, 0.0  ;;  %vm793_vm11 = vcmp.eq.f32.partialorder %v789_v30, inf }
 0x39f   :  { %v877_v36 = vpack.c.b16 %v876_v34, %v876_v34  ;;  %v796_v41 = vand.u32 2147483648, %v789_v30  ;;  %vm795_vm12 = vcmp.eq.f32.partialorder %v789_v30, 0.0 }
 0x3a0   :  { %v790_v37 = vadd.f32 1e-06, %v788_v35 }
 0x3a1   :  { %1174 = vmatmul.mubr.msk.bf16.vlgmr.msra.gmra.mxu1 %vm50_vm1, %v877_v36 }
 0x3a2   :  { %1197 = vrsqrt.f32 %v790_v37  ;;  %vm800_vm13 = vcmp.eq.f32.partialorder %v790_v37, inf  ;;  %v803_v45 = vand.u32 2147483648, %v790_v37  ;;  %vm802_vm14 = vcmp.eq.f32.partialorder %v790_v37, 0.0 }
 0x3ab   :  { %v1196_v38 = vpop.eup %1195 }
 0x3ac   :  { %v792_v39 = vmul.f32 %v1196_v38, %v789_v30 }
 0x3ae   :  { %v794_v40 = vsel %vm793_vm11, %v789_v30, %v792_v39 }
 0x3af   :  { %v1198_v42 = vpop.eup %1197  ;;  %v797_v43 = vsel %vm795_vm12, %v796_v41, %v794_v40 }
 0x3b0   :  { %v799_v44 = vmul.f32 %v1198_v42, %v790_v37  ;;  %v820_v47 = vpack.c.bf16 %v797_v43, %v797_v43 }
 0x3b2   :  { %v801_v46 = vsel %vm800_vm13, %v790_v37, %v799_v44  ;;  %v824_v50 = vunpack.c.l.b16 %v820_v47 }
 0x3b3   :  { %v804_v48 = vsel %vm802_vm14, %v803_v45, %v801_v46 }
 0x3b4   :  { %v821_v49 = vpack.c.bf16 %v804_v48, %v804_v48 }
 0x3b6   :  { %v825_v51 = vunpack.c.l.b16 %v821_v49 }
 0x3b8   :  { %v827_v52 = vsel %vm826_vm10, %v825_v51, %v824_v50 }
 0x3b9   :  { %v828_v53 = vpack.c.b16 %v827_v52, %v827_v52 }
 0x3bb   :  { %1166 = vmatmul.mubr.msk.bf16.vlgmr.msra.gmra.mxu0 %vm50_vm1, %v828_v53 }
 0x3bc   :  { %1181 = vmatprep.mubr.msk.bf16.mxu0 %vm1229_vm0, %v1228_v0  ;;  %1178 = vmatpush3.bf16.msra.mxu0 %v931_v56  ;;  %vm999_vm0 = vcmask 392192  }
 0x3bd   :  { %1179 = vmatprep.subr.bf16.mxu0 %v1228_v0  ;;  %v1023_v0 = vld [vmem:[%s1397_s3 + $0x3] ss:$0 sm:$0xff]  ;;  %s1230_s3 = smov 32  }
 0x3c0   :  { %1180 = vmatpush3.bf16.msra.mxu0 %v930_v59 }
 0x461   :  { %v915_v60 = vpop.f32.mrf.mxu1 }
 0x463   :  { %v1175_v61 = vpop.f32.mrf.mxu1 }
 0x465   :  { %v918_v62 = vpop.f32.mrf.mxu1 }
 0x467   :  { %v1176_v63 = vpop.f32.mrf.mxu1 }
 0x47b   :  { %v866_v2 = vpop.f32.mrf.mxu0 }
 0x47c   :  { %v916_v3 = vadd.f32 %v915_v60, %v866_v2 }
 0x47d   :  { %v1167_v4 = vpop.f32.mrf.mxu0 }
 0x47e   :  { %v925_v5 = vadd.f32 %v1022_v1, %v916_v3 }
 0x47f   :  { %v869_v6 = vpop.f32.mrf.mxu0 }
 0x480   :  { %v933_v7 = vpack.c.bf16 %v925_v5, %v925_v5 }
 0x481   :  { %v1168_v8 = vpop.f32.mrf.mxu0 }
 0x482   :  { %1182 = vmatmul.mubr.msk.bf16.vlgmr.msra.gmra.mxu0 %vm50_vm1, %v933_v7 }
 0x542   :  { %v975_v9 = vpop.f32.mrf.mxu0 }
 0x543   :  { %v976_v10 = vadd.f32 %v1023_v0, %v975_v9 }
 0x544   :  { %v1183_v11 = vpop.f32.mrf.mxu0 }
 0x545   :  { %v982_v12 = vsel %vm981_vm15, %v976_v10, -inf }
 0x546   :  { %983 = vmax.xlane.f32.xlu0 %v982_v12  ;;  %v978_v13 = vpop.f32.mrf.mxu0 }
 0x548   :  { %v1184_v14 = vpop.f32.mrf.mxu0 }
 0x5cf   :  { %v984_v15 = vpop.xlane.xlu0 %983 }
 0x5d0   :  { %v985_v16 = vsub.f32 %v976_v10, %v984_v15 }
 0x5d2   :  { %v986_v17 = vmul.f32 1.442695, %v985_v16 }
 0x5d4   :  { %1199 = vpow2.f32 %v986_v17 }
 0x5e1   :  { %v1200_v18 = vpop.eup %1199 }
 0x5e2   :  { %v988_v19 = vsel %vm981_vm15, %v1200_v18, 0.0 }
 0x5e3   :  { %989 = vadd.xlane.f32.xlu0 %v988_v19 }
 0x66c   :  { %v990_v20 = vpop.xlane.xlu0 %989 }
 0x66d   :  { %1201 = vlog2.f32 %v990_v20 }
 0x67a   :  { %v1202_v21 = vpop.eup %1201 }
 0x67b   :  { %v992_v22 = vmul.f32 0.6931472, %v1202_v21 }
 0x67d   :  { %v993_v23 = vsub.f32 %v985_v16, %v992_v22 }
 0x67f   :  { %995 = vrot.lane.b32.xlu1 %v993_v23, %s1230_s3 }
 0x6f1   :  { %v996_v24 = vpop.permute.xlu1 %995 }
 0x6f2   :  { %v998_v25 = vsel %vm50_vm1, %v925_v5, %v996_v24 }
 0x6f3   :  { %v1000_v26 = vsel %vm999_vm0, %v998_v25, 0.0 }
 0x6f4   :  { %1001 = vst [vmem:[%s1398_s4] sm:$0x3] %v1000_v26 }
 0x6f5   :  { %1006 = vsyncpa [#allocation3], 1 }

</bundles_post_ra>
